<compile_context>
chip_gen: v7x
topology: tpu7x:2x2x1
jax: 0.10.0
libtpu: 0.0.40
codegen_flags: <defaults>
</compile_context>

<pallas_src>
import jax
import jax.numpy as jnp
from jax.experimental import pallas as pl
from jax.experimental.pallas import tpu as pltpu


def _round_up(n, m):
    return ((n + m - 1) // m) * m


def soft_oim_loss_kernel(x_ref, lutT_ref, w_ref, bias_ref, out_ref,
                         m_l, s_l, u):
    """Online logsumexp over class tiles + softmax(targets)-weighted logit sum."""
    ci = pl.program_id(1)

    @pl.when(ci == 0)
    def _():
        m_l[...] = jnp.full_like(m_l, -1e30)
        s_l[...] = jnp.zeros_like(s_l)
        u[...] = jnp.zeros_like(u)

    # (B_t, D) x (D, C_t) plain contraction -> MXU, f32 accumulate.
    logits = jnp.dot(x_ref[...], lutT_ref[...],
                     preferred_element_type=jnp.float32)            # (bt, ct)
    # Additive class-padding mask: 0 on real classes, -1e30 on padded columns.
    logits = logits + bias_ref[...]                                  # (1, ct) bcast

    # Online logsumexp across C tiles.
    m_new = jnp.maximum(m_l[...], jnp.max(logits, axis=1, keepdims=True))
    s_l[...] = (s_l[...] * jnp.exp(m_l[...] - m_new)
                + jnp.sum(jnp.exp(logits - m_new), axis=1, keepdims=True))
    m_l[...] = m_new

    # Precomputed softmax(targets) weights: zero on padded columns/rows, so the
    # masked (-1e30) logits contribute exactly 0 to the weighted sum.
    u[...] = u[...] + jnp.sum(w_ref[...].astype(jnp.float32) * logits,
                              axis=1, keepdims=True)

    @pl.when(ci == pl.num_programs(1) - 1)
    def _():
        # loss_row = logsumexp(logits) - sum_j softmax(targets)_j * logits_j
        out_ref[...] = m_l[...] + jnp.log(s_l[...]) - u[...]         # (bt, 1)


def make_soft_oim_loss(lut, *, block_b=256, block_c=1024, use_bf16=False,
                       vmem_limit_bytes=None):
    """Prepare the OIM LUT once (transpose/pad/cast); return loss(inputs, targets).

    lut: (num_classes, num_features).  Call this once per LUT update so the
    full (C, D) transpose/pad pass is not repeated on every loss evaluation.
    """
    C, D = lut.shape
    compute_dtype = jnp.bfloat16 if use_bf16 else jnp.float32
    row_mult = 16 if use_bf16 else 8          # bf16 sublane packing needs 16 rows

    bc = min(block_c, _round_up(C, 128))
    C_pad = _round_up(C, bc)
    D_pad = _round_up(D, 128)                 # full MXU contraction depth

    # Hoisted one-time LUT prep: (C, D) -> padded (D_pad, C_pad), kernel dtype.
    lutT = jnp.pad(lut.astype(jnp.float32).T,
                   ((0, D_pad - D), (0, C_pad - C))).astype(compute_dtype)
    # Class-padding bias row (always f32).
    bias = jnp.where(jnp.arange(C_pad) < C, 0.0, -1e30)
    bias = bias.astype(jnp.float32).reshape(1, C_pad)

    def loss_fn(inputs, targets):
        B, Din = inputs.shape
        assert Din == D and targets.shape == (B, C)

        # Clamp the batch tile to the padded batch (demo shapes are tiny).
        # NOTE: on v7x (2 TensorCores) prefer block_b <= B_pad/2 so both cores
        # get batch blocks; with the 256 default this holds for B >= 512.
        bb = min(block_b, _round_up(B, row_mult))
        B_pad = _round_up(B, bb)
        nb, nc = B_pad // bb, C_pad // bc

        x = jnp.pad(inputs.astype(jnp.float32),
                    ((0, B_pad - B), (0, D_pad - D))).astype(compute_dtype)
        # Precompute softmax(targets) here (fuses with pad/cast); padded rows and
        # padded class columns get exactly-zero weight.
        w = jax.nn.softmax(targets.astype(jnp.float32), axis=1)
        w = jnp.pad(w, ((0, B_pad - B), (0, C_pad - C))).astype(compute_dtype)

        # VMEM budget: 2x double-buffered (x + lutT + w + bias + out) tiles plus
        # ~4 f32 (bb, bc) temporaries; capped at 60 MiB so it fits v7x's 64 MiB.
        esz = jnp.dtype(compute_dtype).itemsize
        est = (2 * (bb * D_pad * esz + D_pad * bc * esz + bb * bc * esz
                    + bc * 4 + bb * 4)
               + 4 * bb * bc * 4 + (2 << 20))
        vlim = vmem_limit_bytes
        if vlim is None:
            vlim = min(max(est, 32 << 20), 60 << 20)

        per_row = pl.pallas_call(
            soft_oim_loss_kernel,
            out_shape=jax.ShapeDtypeStruct((B_pad, 1), jnp.float32),
            grid_spec=pltpu.PrefetchScalarGridSpec(
                num_scalar_prefetch=0,
                grid=(nb, nc),                       # C innermost (reduction)
                in_specs=[
                    pl.BlockSpec((bb, D_pad), lambda bi, ci: (bi, 0)),
                    pl.BlockSpec((D_pad, bc), lambda bi, ci: (0, ci)),
                    pl.BlockSpec((bb, bc), lambda bi, ci: (bi, ci)),
                    pl.BlockSpec((1, bc), lambda bi, ci: (0, ci)),
                ],
                out_specs=pl.BlockSpec((bb, 1), lambda bi, ci: (bi, 0)),
                scratch_shapes=[pltpu.VMEM((bb, 1), jnp.float32)] * 3,
            ),
            compiler_params=pltpu.CompilerParams(
                dimension_semantics=("parallel", "arbitrary"),
                vmem_limit_bytes=vlim,
            ),
        )(x, lutT, w, bias)

        # (-soft * log_probs).mean(0).sum() == sum of per-row losses / B
        return jnp.sum(per_row[:B, 0]) / B

    return loss_fn


def soft_oim_loss_ref(inputs, targets, lut):
    logits = jnp.dot(inputs, lut.T, precision=jax.lax.Precision.HIGHEST)
    log_probs = jax.nn.log_softmax(logits, axis=1)
    soft = jax.nn.softmax(targets, axis=1)
    return jnp.sum(jnp.mean(-soft * log_probs, axis=0))


if __name__ == "__main__":
    # Small but non-trivial: exercises batch padding (13 -> 16), class padding
    # (200 -> 256), and feature padding (64 -> 128).
    B, D, C = 13, 64, 200  # batch, num_features, num_classes

    key = jax.random.PRNGKey(0)
    k_in, k_tgt, k_lut = jax.random.split(key, 3)

    inputs = jax.random.normal(k_in, (B, D), dtype=jnp.float32)
    targets = jax.random.normal(k_tgt, (B, C), dtype=jnp.float32)  # soft targets
    lut = jax.random.normal(k_lut, (C, D), dtype=jnp.float32)
    lut = lut / jnp.linalg.norm(lut, axis=1, keepdims=True)  # unit-norm rows

    loss_fn = make_soft_oim_loss(lut)          # LUT prep hoisted out of the call
    loss = jax.block_until_ready(loss_fn(inputs, targets))
    ref = jax.block_until_ready(soft_oim_loss_ref(inputs, targets, lut))

    assert jnp.allclose(loss, ref, atol=1e-4, rtol=1e-4), (loss, ref)
    print("KERNEL_OK")
</pallas_src>

<mosaic_0001>
module attributes {stable_mosaic.version = 11 : i64} {
  func.func @soft_oim_loss_kernel(%arg0: i32, %arg1: i32, %arg2: memref<16x128xf32, #tpu.memory_space<vmem>>, %arg3: memref<128x256xf32, #tpu.memory_space<vmem>>, %arg4: memref<16x256xf32, #tpu.memory_space<vmem>>, %arg5: memref<1x256xf32, #tpu.memory_space<vmem>>, %arg6: memref<16x1xf32, #tpu.memory_space<vmem>>, %arg7: memref<16x1xf32, #tpu.memory_space<vmem>>, %arg8: memref<16x1xf32, #tpu.memory_space<vmem>>, %arg9: memref<16x1xf32, #tpu.memory_space<vmem>>) attributes {dimension_semantics = [#tpu.dimension_semantics<parallel>, #tpu.dimension_semantics<arbitrary>], iteration_bounds = array<i64: 1, 1>, scalar_prefetch = 0 : i64, scratch_operands = 3 : i64, tpu.core_type = #tpu.core_type<tc>, window_params = [{transform_indices = @transform_0, window_bounds = array<i64: 16, 128>}, {transform_indices = @transform_1, window_bounds = array<i64: 128, 256>}, {transform_indices = @transform_2, window_bounds = array<i64: 16, 256>}, {transform_indices = @transform_3, window_bounds = array<i64: 1, 256>}, {transform_indices = @transform_4, window_bounds = array<i64: 16, 1>}]} {
    %c0_i32 = arith.constant 0 : i32
    %0 = arith.cmpi eq, %arg1, %c0_i32 : i32
    %1 = arith.extui %0 : i1 to i32
    %c0_i32_0 = arith.constant 0 : i32
    %2 = arith.cmpi ne, %1, %c0_i32_0 : i32
    scf.if %2 {
      %cst_27 = arith.constant -1.000000e+30 : f32
      %36 = vector.broadcast %cst_27 : f32 to vector<16x1xf32>
      %c0_28 = arith.constant 0 : index
      %c0_29 = arith.constant 0 : index
      %37 = vector.load %arg7[%c0_28, %c0_29] : memref<16x1xf32, #tpu.memory_space<vmem>>, vector<16x1xf32>
      tpu.vector_store %arg7[%c0_28, %c0_29], %36 {strides = array<i32>} : memref<16x1xf32, #tpu.memory_space<vmem>>, vector<16x1xf32>,
      %cst_30 = arith.constant 0.000000e+00 : f32
      %38 = vector.broadcast %cst_30 : f32 to vector<16x1xf32>
      %c0_31 = arith.constant 0 : index
      %c0_32 = arith.constant 0 : index
      %39 = vector.load %arg8[%c0_31, %c0_32] : memref<16x1xf32, #tpu.memory_space<vmem>>, vector<16x1xf32>
      tpu.vector_store %arg8[%c0_31, %c0_32], %38 {strides = array<i32>} : memref<16x1xf32, #tpu.memory_space<vmem>>, vector<16x1xf32>,
      %cst_33 = arith.constant 0.000000e+00 : f32
      %40 = vector.broadcast %cst_33 : f32 to vector<16x1xf32>
      %c0_34 = arith.constant 0 : index
      %c0_35 = arith.constant 0 : index
      %41 = vector.load %arg9[%c0_34, %c0_35] : memref<16x1xf32, #tpu.memory_space<vmem>>, vector<16x1xf32>
      tpu.vector_store %arg9[%c0_34, %c0_35], %40 {strides = array<i32>} : memref<16x1xf32, #tpu.memory_space<vmem>>, vector<16x1xf32>,
    } else {
    }
    %c0 = arith.constant 0 : index
    %c0_1 = arith.constant 0 : index
    %3 = vector.load %arg2[%c0, %c0_1] : memref<16x128xf32, #tpu.memory_space<vmem>>, vector<16x128xf32>
    %c0_2 = arith.constant 0 : index
    %c0_3 = arith.constant 0 : index
    %4 = vector.load %arg3[%c0_2, %c0_3] : memref<128x256xf32, #tpu.memory_space<vmem>>, vector<128x256xf32>
    %cst = arith.constant dense<0.000000e+00> : vector<16x256xf32>
    %5 = tpu.matmul %3, %4, %cst {dimension_numbers = #tpu.dot_dimension_numbers<[1], [0], [0], [1], [0, 0, 1, 1], [], []>} : vector<16x128xf32>, vector<128x256xf32>, vector<16x256xf32> -> vector<16x256xf32>
    %c0_4 = arith.constant 0 : index
    %c0_5 = arith.constant 0 : index
    %6 = vector.load %arg5[%c0_4, %c0_5] : memref<1x256xf32, #tpu.memory_space<vmem>>, vector<1x256xf32>
    %7 = vector.broadcast %6 : vector<1x256xf32> to vector<16x256xf32>
    %8 = arith.addf %5, %7 : vector<16x256xf32>
    %c0_6 = arith.constant 0 : index
    %c0_7 = arith.constant 0 : index
    %9 = vector.load %arg7[%c0_6, %c0_7] : memref<16x1xf32, #tpu.memory_space<vmem>>, vector<16x1xf32>
    %cst_8 = arith.constant dense<0xFF800000> : vector<16xf32>
    %10 = vector.multi_reduction <maximumf>, %8, %cst_8 [1] : vector<16x256xf32> to vector<16xf32>
    %11 = vector.shape_cast %10 : vector<16xf32> to vector<16x1xf32>
    %12 = arith.maximumf %9, %11 : vector<16x1xf32>
    %c0_9 = arith.constant 0 : index
    %c0_10 = arith.constant 0 : index
    %13 = vector.load %arg8[%c0_9, %c0_10] : memref<16x1xf32, #tpu.memory_space<vmem>>, vector<16x1xf32>
    %c0_11 = arith.constant 0 : index
    %c0_12 = arith.constant 0 : index
    %14 = vector.load %arg7[%c0_11, %c0_12] : memref<16x1xf32, #tpu.memory_space<vmem>>, vector<16x1xf32>
    %15 = arith.subf %14, %12 : vector<16x1xf32>
    %16 = math.exp %15 : vector<16x1xf32>
    %17 = arith.mulf %13, %16 : vector<16x1xf32>
    %18 = vector.broadcast %12 : vector<16x1xf32> to vector<16x256xf32>
    %19 = arith.subf %8, %18 : vector<16x256xf32>
    %20 = math.exp %19 : vector<16x256xf32>
    %cst_13 = arith.constant dense<0.000000e+00> : vector<16xf32>
    %21 = vector.multi_reduction <add>, %20, %cst_13 [1] : vector<16x256xf32> to vector<16xf32>
    %22 = vector.shape_cast %21 : vector<16xf32> to vector<16x1xf32>
    %23 = arith.addf %17, %22 : vector<16x1xf32>
    %c0_14 = arith.constant 0 : index
    %c0_15 = arith.constant 0 : index
    %24 = vector.load %arg8[%c0_14, %c0_15] : memref<16x1xf32, #tpu.memory_space<vmem>>, vector<16x1xf32>
    tpu.vector_store %arg8[%c0_14, %c0_15], %23 {strides = array<i32>} : memref<16x1xf32, #tpu.memory_space<vmem>>, vector<16x1xf32>,
    %c0_16 = arith.constant 0 : index
    %c0_17 = arith.constant 0 : index
    %25 = vector.load %arg7[%c0_16, %c0_17] : memref<16x1xf32, #tpu.memory_space<vmem>>, vector<16x1xf32>
    tpu.vector_store %arg7[%c0_16, %c0_17], %12 {strides = array<i32>} : memref<16x1xf32, #tpu.memory_space<vmem>>, vector<16x1xf32>,
    %c0_18 = arith.constant 0 : index
    %c0_19 = arith.constant 0 : index
    %26 = vector.load %arg9[%c0_18, %c0_19] : memref<16x1xf32, #tpu.memory_space<vmem>>, vector<16x1xf32>
    %c0_20 = arith.constant 0 : index
    %c0_21 = arith.constant 0 : index
    %27 = vector.load %arg4[%c0_20, %c0_21] : memref<16x256xf32, #tpu.memory_space<vmem>>, vector<16x256xf32>
    %28 = arith.mulf %27, %8 : vector<16x256xf32>
    %cst_22 = arith.constant dense<0.000000e+00> : vector<16xf32>
    %29 = vector.multi_reduction <add>, %28, %cst_22 [1] : vector<16x256xf32> to vector<16xf32>
    %30 = vector.shape_cast %29 : vector<16xf32> to vector<16x1xf32>
    %31 = arith.addf %26, %30 : vector<16x1xf32>
    %c0_23 = arith.constant 0 : index
    %c0_24 = arith.constant 0 : index
    %32 = vector.load %arg9[%c0_23, %c0_24] : memref<16x1xf32, #tpu.memory_space<vmem>>, vector<16x1xf32>
    tpu.vector_store %arg9[%c0_23, %c0_24], %31 {strides = array<i32>} : memref<16x1xf32, #tpu.memory_space<vmem>>, vector<16x1xf32>,
    %c0_i32_25 = arith.constant 0 : i32
    %33 = arith.cmpi eq, %arg1, %c0_i32_25 : i32
    %34 = arith.extui %33 : i1 to i32
    %c0_i32_26 = arith.constant 0 : i32
    %35 = arith.cmpi ne, %34, %c0_i32_26 : i32
    scf.if %35 {
      %c0_27 = arith.constant 0 : index
      %c0_28 = arith.constant 0 : index
      %36 = vector.load %arg7[%c0_27, %c0_28] : memref<16x1xf32, #tpu.memory_space<vmem>>, vector<16x1xf32>
      %c0_29 = arith.constant 0 : index
      %c0_30 = arith.constant 0 : index
      %37 = vector.load %arg8[%c0_29, %c0_30] : memref<16x1xf32, #tpu.memory_space<vmem>>, vector<16x1xf32>
      %38 = math.log %37 : vector<16x1xf32>
      %39 = arith.addf %36, %38 : vector<16x1xf32>
      %c0_31 = arith.constant 0 : index
      %c0_32 = arith.constant 0 : index
      %40 = vector.load %arg9[%c0_31, %c0_32] : memref<16x1xf32, #tpu.memory_space<vmem>>, vector<16x1xf32>
      %41 = arith.subf %39, %40 : vector<16x1xf32>
      %c0_33 = arith.constant 0 : index
      %c0_34 = arith.constant 0 : index
      %42 = vector.load %arg6[%c0_33, %c0_34] : memref<16x1xf32, #tpu.memory_space<vmem>>, vector<16x1xf32>
      tpu.vector_store %arg6[%c0_33, %c0_34], %41 {strides = array<i32>} : memref<16x1xf32, #tpu.memory_space<vmem>>, vector<16x1xf32>,
    } else {
    }
    return
  }
  func.func @transform_0(%arg0: i32, %arg1: i32) -> (i32, i32) {
    %c0_i32 = arith.constant 0 : i32
    %c0_i32_0 = arith.constant 0 : i32
    return %arg0, %c0_i32 : i32, i32
  }
  func.func @transform_1(%arg0: i32, %arg1: i32) -> (i32, i32) {
    %c0_i32 = arith.constant 0 : i32
    %c0_i32_0 = arith.constant 0 : i32
    return %c0_i32, %arg1 : i32, i32
  }
  func.func @transform_2(%arg0: i32, %arg1: i32) -> (i32, i32) {
    %c0_i32 = arith.constant 0 : i32
    return %arg0, %arg1 : i32, i32
  }
  func.func @transform_3(%arg0: i32, %arg1: i32) -> (i32, i32) {
    %c0_i32 = arith.constant 0 : i32
    %c0_i32_0 = arith.constant 0 : i32
    return %c0_i32, %arg1 : i32, i32
  }
  func.func @transform_4(%arg0: i32, %arg1: i32) -> (i32, i32) {
    %c0_i32 = arith.constant 0 : i32
    %c0_i32_0 = arith.constant 0 : i32
    return %arg0, %c0_i32 : i32, i32
  }
}

</mosaic_0001>

<bundles_post_ra>
// kernel: tpu_custom_call.1
= control target key start
LH: loop header
LB: loop body
LE: loop exit
PB: predicated region body
PF: predicated region fallthrough
CT: control target
= control target key end

     0   :  { %9 = vsyncpa [#allocation6], 0  ;;  %s544_s0 = inlined_call_operand.hbm [shape: f32[16,128], index: 0, kind: input, shape index: {}]   ;;  %s545_s1 = inlined_call_operand.hbm [shape: f32[128,256], index: 1, kind: input, shape index: {}]   ;;  %s546_s2 = inlined_call_operand.hbm [shape: f32[16,256], index: 2, kind: input, shape index: {}]   ;;  %s547_s3 = inlined_call_operand.vmem [shape: f32[1,256], index: 3, kind: input, shape index: {}]   ;;  %s548_s4 = inlined_call_operand.vmem [shape: f32[16,1], index: 4, kind: output, shape index: {}]  }
   0x1   :  { %10 = vsyncpa [#allocation8], 0  ;;  %s438_s15 = smov [#allocation7]   ;;  %s368_s19 = scalar_lea.hbm %s545_s1, 4096 }
   0x2   :  { %s28_s16 = sshll.u32 %s438_s15, 4  ;;  %p369_p0 = scmp.ne.s32.totalorder %s545_s1, %s368_s19  ;;  %s29_s16 = int_to_ptr.vmem [resolvable:$true] %s28_s16 }
   0x3   :  { %p372_p1 = scmp.lt.u32.totalorder %s368_s19, %s545_s1 }
   0x5   :  { %p374_p2 = pnand %p372_p1, %p369_p0 }
   0x7   :  { %377 = shalt.err (!%p374_p2)
}
   0x8   :  { %s378_s24 = scalar_lea.vmem %s29_s16, 4096  ;;  %p383_p4 = scmp.lt.s32.totalorder %s29_s16, %s29_s16 }
   0x9   :  { %p379_p3 = scmp.ne.s32.totalorder %s29_s16, %s378_s24  ;;  %p384_p5 = scmp.lt.s32.totalorder %s378_s24, %s378_s24 }
   0xb   :  { %p385_p6 = por %p384_p5, %p383_p4 }
   0xd   :  { %p386_p7 = pnand %p385_p6, %p379_p3 }
   0xf   :  { %389 = shalt.err (!%p386_p7)
}
  0x10   :  { %s439_s25 = smov 256   ;;  %s440_s26 = smov 16  }
  0x11   :  { %34 = dma.hbm_to_vmem [thread:$0]  %s545_s1, 4096, %s29_s16, [#allocation8], %s439_s25, %s439_s25, %s440_s26  }
  0x12   :  { %s441_s29 = smov [#allocation5]   ;;  %s390_s7 = scalar_lea.hbm %s544_s0, 256 }
  0x13   :  { %s16_s30 = sshll.u32 %s441_s29, 4  ;;  %p391_p8 = scmp.ne.s32.totalorder %s544_s0, %s390_s7  ;;  %s17_s30 = int_to_ptr.vmem [resolvable:$true] %s16_s30 }
  0x14   :  { %p394_p9 = scmp.lt.u32.totalorder %s390_s7, %s544_s0 }
  0x16   :  { %p396_p10 = pnand %p394_p9, %p391_p8 }
  0x18   :  { %399 = shalt.err (!%p396_p10)
}
  0x19   :  { %s400_s12 = scalar_lea.vmem %s17_s30, 256  ;;  %p405_p12 = scmp.lt.s32.totalorder %s17_s30, %s17_s30 }
  0x1a   :  { %p401_p11 = scmp.ne.s32.totalorder %s17_s30, %s400_s12  ;;  %p406_p13 = scmp.lt.s32.totalorder %s400_s12, %s400_s12 }
  0x1c   :  { %p407_p0 = por %p406_p13, %p405_p12 }
  0x1e   :  { %p408_p1 = pnand %p407_p0, %p401_p11 }
  0x20   :  { %411 = shalt.err (!%p408_p1)
}
  0x21   :  { %s442_s1 = smov 128   ;;  %s443_s13 = smov 8  }
  0x22   :  { %22 = dma.hbm_to_vmem [thread:$0]  %s544_s0, 256, %s17_s30, [#allocation6], %s442_s1, %s442_s1, %s443_s13  }
  0x23   :  { %s444_s16 = smov [#allocation9]   ;;  %s412_s20 = scalar_lea.hbm %s546_s2, 512 }
  0x24   :  { %s40_s17 = sshll.u32 %s444_s16, 4  ;;  %p413_p2 = scmp.ne.s32.totalorder %s546_s2, %s412_s20  ;;  %s41_s17 = int_to_ptr.vmem [resolvable:$true] %s40_s17 }
  0x25   :  { %p416_p3 = scmp.lt.u32.totalorder %s412_s20, %s546_s2 }
  0x27   :  { %p418_p4 = pnand %p416_p3, %p413_p2 }
  0x29   :  { %421 = shalt.err (!%p418_p4)
}
  0x2a   :  { %s422_s27 = scalar_lea.vmem %s41_s17, 512  ;;  %p427_p6 = scmp.lt.s32.totalorder %s41_s17, %s41_s17 }
  0x2b   :  { %p423_p5 = scmp.ne.s32.totalorder %s41_s17, %s422_s27  ;;  %p428_p7 = scmp.lt.s32.totalorder %s422_s27, %s422_s27 }
  0x2d   :  { %p429_p8 = por %p428_p7, %p427_p6 }
  0x2f   :  { %p430_p9 = pnand %p429_p8, %p423_p5 }
  0x31   :  { %433 = shalt.err (!%p430_p9)
}
  0x32   :  { %46 = dma.hbm_to_vmem [thread:$0]  %s546_s2, 512, %s41_s17, [#allocation8], %s439_s25, %s439_s25, %s440_s26  }
  0x33   :  { %434 = dma.done.wait [#allocation6], 256  }
  0x34   :  { %435 = vsyncadd [#allocation6], 4294967040 }
  0x35   :  { %436 = dma.done.wait [#allocation8], 4608  }
  0x36   :  { %437 = vsyncadd [#allocation8], 4294962688  ;;  %v445_v0 = vmov 0.0   ;;  %v72_v1 = vld [vmem:[#allocation7 + $0x8] sm:$0xff]  ;;  %v74_v2 = vld [vmem:[#allocation7 + $0x18] sm:$0xff]  ;;  %vm62_vm0 = vcmask 7168   ;;  %v105_v52 = vlaneseq }
  0x37   :  { %179 = vmatprep.mubr.f32.mxu0 %v445_v0  ;;  %185 = vmatprep.mubr.f32.mxu1 %v445_v0  ;;  %v71_v3 = vld [vmem:[#allocation7] sm:$0xff]  ;;  %v292_v4 = vpack.c.bf16 %v74_v2, %v72_v1  ;;  %v73_v5 = vld [vmem:[#allocation7 + $0x10] sm:$0xff]  ;;  %v76_v6 = vld [vmem:[#allocation7 + $0x28] sm:$0xff]  ;;  %v446_v51 = vmov -1e+30   ;;  %65 = vst.msk [vmem:[#allocation3] sm:$0xff] %vm62_vm0, %v445_v0 }
  0x38   :  { %v78_v7 = vld [vmem:[#allocation7 + $0x38] sm:$0xff]  ;;  %v294_v8 = vpack.c.bf16 %v73_v5, %v71_v3  ;;  %v75_v10 = vld [vmem:[#allocation7 + $0x20] sm:$0xff]  ;;  %v77_v11 = vld [vmem:[#allocation7 + $0x30] sm:$0xff]  ;;  %63 = vst.msk [vmem:[#allocation2] sm:$0xff] %vm62_vm0, %v446_v51  ;;  %v106_v53 = vshrl.u32 %v105_v52, 7  ;;  %v447_v5 = vmov 0  }
  0x39   :  { %v296_v9 = vpack.c.bf16 %v78_v7, %v76_v6  ;;  %v80_v12 = vld [vmem:[#allocation7 + $0x48] sm:$0xff]  ;;  %293 = vmatprep.subr.bf16.mxu0 %v292_v4  ;;  %324 = vmatprep.subr.bf16.mxu1 %v292_v4  ;;  %v82_v13 = vld [vmem:[#allocation7 + $0x58] sm:$0xff]  ;;  %v298_v14 = vpack.c.bf16 %v77_v11, %v75_v10  ;;  %v79_v16 = vld [vmem:[#allocation7 + $0x40] sm:$0xff]  ;;  %64 = vst.msk [vmem:[#allocation2 + $0x8] sm:$0xff] %vm62_vm0, %v446_v51 }
  0x3a   :  { %295 = vmatpush1.bf16.msra.mxu0 %v294_v8  ;;  %332 = vmatpush1.bf16.msra.mxu1 %v294_v8  ;;  %v300_v15 = vpack.c.bf16 %v82_v13, %v80_v12  ;;  %v81_v17 = vld [vmem:[#allocation7 + $0x50] sm:$0xff]  ;;  %v84_v18 = vld [vmem:[#allocation7 + $0x68] sm:$0xff]  ;;  %v86_v19 = vld [vmem:[#allocation7 + $0x78] sm:$0xff]  ;;  %66 = vst.msk [vmem:[#allocation3 + $0x8] sm:$0xff] %vm62_vm0, %v445_v0  ;;  %v107_v54 = vsub.s32 0, %v106_v53  ;;  %v111_v56 = vsub.s32 1, %v106_v53 }
  0x3b   :  { %297 = vmatprep.subr.bf16.mxu0 %v296_v9  ;;  %325 = vmatprep.subr.bf16.mxu1 %v296_v9  ;;  %v302_v20 = vpack.c.bf16 %v81_v17, %v79_v16  ;;  %v304_v21 = vpack.c.bf16 %v86_v19, %v84_v18  ;;  %v83_v22 = vld [vmem:[#allocation7 + $0x60] sm:$0xff]  ;;  %v85_v23 = vld [vmem:[#allocation7 + $0x70] sm:$0xff]  ;;  %v88_v24 = vld [vmem:[#allocation7 + $0x88] sm:$0xff]  ;;  %67 = vst.msk [vmem:[#allocation4] sm:$0xff] %vm62_vm0, %v445_v0 }
  0x3c   :  { %v90_v25 = vld [vmem:[#allocation7 + $0x98] sm:$0xff]  ;;  %v306_v26 = vpack.c.bf16 %v85_v23, %v83_v22  ;;  %v87_v28 = vld [vmem:[#allocation7 + $0x80] sm:$0xff]  ;;  %v89_v29 = vld [vmem:[#allocation7 + $0x90] sm:$0xff]  ;;  %68 = vst.msk [vmem:[#allocation4 + $0x8] sm:$0xff] %vm62_vm0, %v445_v0  ;;  %350 = vset.pattern.permute.xlu1 %v447_v5  ;;  %351 = vset.pattern.permute.xlu0 %v447_v5 }
  0x3d   :  { %v308_v27 = vpack.c.bf16 %v90_v25, %v88_v24  ;;  %v92_v30 = vld [vmem:[#allocation7 + $0xa8] sm:$0xff]  ;;  %v94_v31 = vld [vmem:[#allocation7 + $0xb8] sm:$0xff]  ;;  %v310_v32 = vpack.c.bf16 %v89_v29, %v87_v28  ;;  %v91_v34 = vld [vmem:[#allocation7 + $0xa0] sm:$0xff] }
  0x3e   :  { %299 = vmatpush1.bf16.msra.mxu0 %v298_v14  ;;  %333 = vmatpush1.bf16.msra.mxu1 %v298_v14  ;;  %v312_v33 = vpack.c.bf16 %v94_v31, %v92_v30  ;;  %v93_v35 = vld [vmem:[#allocation7 + $0xb0] sm:$0xff]  ;;  %v96_v36 = vld [vmem:[#allocation7 + $0xc8] sm:$0xff]  ;;  %v98_v37 = vld [vmem:[#allocation7 + $0xd8] sm:$0xff] }
  0x3f   :  { %301 = vmatprep.subr.bf16.mxu0 %v300_v15  ;;  %326 = vmatprep.subr.bf16.mxu1 %v300_v15  ;;  %v314_v38 = vpack.c.bf16 %v93_v35, %v91_v34  ;;  %v316_v39 = vpack.c.bf16 %v98_v37, %v96_v36  ;;  %v95_v40 = vld [vmem:[#allocation7 + $0xc0] sm:$0xff]  ;;  %v97_v41 = vld [vmem:[#allocation7 + $0xd0] sm:$0xff]  ;;  %v100_v42 = vld [vmem:[#allocation7 + $0xe8] sm:$0xff] }
  0x40   :  { %v102_v43 = vld [vmem:[#allocation7 + $0xf8] sm:$0xff]  ;;  %v318_v44 = vpack.c.bf16 %v97_v41, %v95_v40  ;;  %v99_v46 = vld [vmem:[#allocation7 + $0xe0] sm:$0xff]  ;;  %v101_v47 = vld [vmem:[#allocation7 + $0xf0] sm:$0xff] }
  0x41   :  { %v320_v45 = vpack.c.bf16 %v102_v43, %v100_v42  ;;  %v322_v48 = vpack.c.bf16 %v101_v47, %v99_v46  ;;  %v69_v49 = vld [vmem:[#allocation5] sm:$0xff]  ;;  %v70_v50 = vld [vmem:[#allocation5 + $0x8] sm:$0xff]  ;;  %v192_v6 = vld [vmem:[#allocation2] sm:$0xff] }
  0x42   :  { %303 = vmatpush1.bf16.msra.mxu0 %v302_v20  ;;  %334 = vmatpush1.bf16.msra.mxu1 %v302_v20  ;;  %v103_v55 = vld [vmem:[%s547_s3] sm:$0x3]  ;;  %v193_v9 = vld [vmem:[#allocation2 + $0x8] sm:$0xff]  ;;  %v249_v24 = vld [vmem:[#allocation9] sm:$0xff] }
  0x43   :  { %305 = vmatprep.subr.bf16.mxu0 %v304_v21  ;;  %327 = vmatprep.subr.bf16.mxu1 %v304_v21  ;;  %v108_v57 = vrot.slane %v103_v55, %v107_v54  ;;  %v112_v58 = vrot.slane %v103_v55, %v111_v56  ;;  %v250_v25 = vld [vmem:[#allocation9 + $0x8] sm:$0xff]  ;;  %v251_v31 = vld [vmem:[#allocation9 + $0x10] sm:$0xff]  ;;  %v203_v47 = vld [vmem:[#allocation3 + $0x8] sm:$0xff] }
  0x44   :  { %v202_v43 = vld [vmem:[#allocation3] sm:$0xff]  ;;  %v248_v55 = vld [vmem:[#allocation4 + $0x8] sm:$0xff] }
  0x46   :  { %307 = vmatpush1.bf16.msra.mxu0 %v306_v26  ;;  %335 = vmatpush1.bf16.msra.mxu1 %v306_v26 }
  0x47   :  { %309 = vmatprep.subr.bf16.mxu0 %v308_v27  ;;  %328 = vmatprep.subr.bf16.mxu1 %v308_v27 }
  0x4a   :  { %311 = vmatpush1.bf16.msra.mxu0 %v310_v32  ;;  %336 = vmatpush1.bf16.msra.mxu1 %v310_v32  ;;  %v252_v32 = vld [vmem:[#allocation9 + $0x18] sm:$0xff] }
  0x4b   :  { %313 = vmatprep.subr.bf16.mxu0 %v312_v33  ;;  %329 = vmatprep.subr.bf16.mxu1 %v312_v33 }
  0x4e   :  { %315 = vmatpush1.bf16.msra.mxu0 %v314_v38  ;;  %337 = vmatpush1.bf16.msra.mxu1 %v314_v38 }
  0x4f   :  { %317 = vmatprep.subr.bf16.mxu0 %v316_v39  ;;  %330 = vmatprep.subr.bf16.mxu1 %v316_v39 }
  0x52   :  { %319 = vmatpush1.bf16.msra.mxu0 %v318_v44  ;;  %338 = vmatpush1.bf16.msra.mxu1 %v318_v44 }
  0x53   :  { %321 = vmatprep.subr.bf16.mxu0 %v320_v45  ;;  %331 = vmatprep.subr.bf16.mxu1 %v320_v45 }
  0x56   :  { %323 = vmatpush1.bf16.msra.mxu0 %v322_v48  ;;  %339 = vmatpush1.bf16.msra.mxu1 %v322_v48 }
  0x59   :  { %180 = vmatmul.mubr.f32.vlgmr.msra.gmra.mrb[0].mxu0 %v69_v49  ;;  %186 = vmatmul.mubr.f32.vlgmr.msra.gmra.mrb[0].mxu1 %v70_v50  ;;  %v247_v49 = vld [vmem:[#allocation4] sm:$0xff] }
 0x12c   :  { %v181_v59 = vpop.f32.mrb[0].mxu0  ;;  %v187_v60 = vpop.f32.mrb[0].mxu1 }
 0x12d   :  { %v182_v61 = vadd.f32 %v181_v59, %v108_v57  ;;  %v183_v62 = vpop.f32.mrb[1].mxu0  ;;  %v189_v63 = vpop.f32.mrb[1].mxu1  ;;  %v188_v2 = vadd.f32 %v187_v60, %v108_v57 }
 0x12e   :  { %v184_v1 = vadd.f32 %v183_v62, %v112_v58  ;;  %v190_v3 = vadd.f32 %v189_v63, %v112_v58 }
 0x12f   :  { %v253_v29 = vmul.f32 %v249_v24, %v182_v61  ;;  %v255_v37 = vmul.f32 %v251_v31, %v188_v2 }
 0x130   :  { %v194_v4 = vmax.f32 %v182_v61, %v184_v1  ;;  %v197_v0 = vmax.f32 %v188_v2, %v190_v3  ;;  %v254_v30 = vmul.f32 %v250_v25, %v184_v1  ;;  %v256_v38 = vmul.f32 %v252_v32, %v190_v3 }
 0x132   :  { %195 = vmax.xlane.f32.xlu0 %v194_v4  ;;  %v257_v35 = vadd.f32 %v254_v30, %v253_v29  ;;  %v260_v39 = vadd.f32 %v256_v38, %v255_v37 }
 0x136   :  { %198 = vmax.xlane.f32.xlu0 %v197_v0 }
 0x1bf   :  { %v196_v7 = vpop.xlane.xlu0 %195 }
 0x1c0   :  { %v200_v8 = vmax.f32 %v192_v6, %v196_v7 }
 0x1c2   :  { %v204_v10 = vsub.f32 %v192_v6, %v200_v8  ;;  %245 = vst.msk [vmem:[#allocation2] sm:$0xff] %vm62_vm0, %v200_v8  ;;  %214 = vperm.xlu1 %350, %v200_v8  }
 0x1c3   :  { %v199_v11 = vpop.xlane.xlu0 %198 }
 0x1c4   :  { %v201_v12 = vmax.f32 %v193_v9, %v199_v11  ;;  %v206_v40 = vmul.f32 1.442695, %v204_v10 }
 0x1c6   :  { %v205_v13 = vsub.f32 %v193_v9, %v201_v12  ;;  %246 = vst.msk [vmem:[#allocation2 + $0x8] sm:$0xff] %vm62_vm0, %v201_v12  ;;  %219 = vperm.xlu1 %350, %v201_v12  }
 0x1c8   :  { %v208_v41 = vmul.f32 1.442695, %v205_v13 }
 0x1c9   :  { %v270_v62 = vld [vmem:[#allocation2] sm:$0xff] }
 0x1cd   :  { %v271_v0 = vld [vmem:[#allocation2 + $0x8] sm:$0xff] }
 0x241   :  { %v215_v14 = vpop.permute.xlu1 %214 }
 0x242   :  { %v222_v15 = vsub.f32 %v182_v61, %v215_v14  ;;  %v223_v16 = vsub.f32 %v184_v1, %v215_v14 }
 0x244   :  { %v226_v17 = vmul.f32 1.442695, %v222_v15  ;;  %v228_v18 = vmul.f32 1.442695, %v223_v16 }
 0x245   :  { %v220_v19 = vpop.permute.xlu1 %219 }
 0x246   :  { %352 = vpow2.f32 %v226_v17  ;;  %v224_v20 = vsub.f32 %v188_v2, %v220_v19  ;;  %v225_v21 = vsub.f32 %v190_v3, %v220_v19 }
 0x247   :  { %354 = vpow2.f32 %v228_v18 }
 0x248   :  { %v230_v22 = vmul.f32 1.442695, %v224_v20  ;;  %v232_v23 = vmul.f32 1.442695, %v225_v21 }
 0x24a   :  { %356 = vpow2.f32 %v230_v22 }
 0x24b   :  { %358 = vpow2.f32 %v232_v23 }
 0x24c   :  { %360 = vpow2.f32 %v206_v40 }
 0x24d   :  { %362 = vpow2.f32 %v208_v41 }
 0x250   :  { %v353_v26 = vpop.eup %352 }
 0x251   :  { %v355_v27 = vpop.eup %354 }
 0x252   :  { %v234_v28 = vadd.f32 %v355_v27, %v353_v26 }
 0x254   :  { %v357_v33 = vpop.eup %356  ;;  %235 = vadd.xlane.f32.xlu0 %v234_v28 }
 0x255   :  { %v359_v34 = vpop.eup %358 }
 0x256   :  { %v237_v36 = vadd.f32 %v359_v34, %v357_v33  ;;  %v361_v42 = vpop.eup %360 }
 0x257   :  { %v210_v44 = vmul.f32 %v361_v42, %v202_v43  ;;  %v363_v45 = vpop.eup %362 }
 0x258   :  { %258 = vadd.xlane.f32.xlu0 %v257_v35  ;;  %238 = vadd.xlane.f32.xlu1 %v237_v36  ;;  %v211_v50 = vmul.f32 %v363_v45, %v203_v47 }
 0x25c   :  { %261 = vadd.xlane.f32.xlu0 %v260_v39 }
 0x2e1   :  { %v236_v46 = vpop.xlane.xlu0 %235 }
 0x2e2   :  { %v240_v48 = vadd.f32 %v236_v46, %v210_v44 }
 0x2e4   :  { %243 = vst.msk [vmem:[#allocation3] sm:$0xff] %vm62_vm0, %v240_v48 }
 0x2e5   :  { %v259_v51 = vpop.xlane.xlu0 %258  ;;  %v239_v52 = vpop.xlane.xlu1 %238 }
 0x2e6   :  { %v263_v53 = vadd.f32 %v259_v51, %v247_v49  ;;  %v241_v54 = vadd.f32 %v239_v52, %v211_v50 }
 0x2e8   :  { %265 = vst.msk [vmem:[#allocation4] sm:$0xff] %vm62_vm0, %v263_v53  ;;  %244 = vst.msk [vmem:[#allocation3 + $0x8] sm:$0xff] %vm62_vm0, %v241_v54 }
 0x2e9   :  { %v262_v56 = vpop.xlane.xlu0 %261 }
 0x2ea   :  { %v264_v57 = vadd.f32 %v262_v56, %v248_v55 }
 0x2eb   :  { %v272_v58 = vld [vmem:[#allocation3] sm:$0xff] }
 0x2ec   :  { %364 = vlog2.f32 %v272_v58  ;;  %266 = vst.msk [vmem:[#allocation4 + $0x8] sm:$0xff] %vm62_vm0, %v264_v57 }
 0x2ef   :  { %v273_v59 = vld [vmem:[#allocation3 + $0x8] sm:$0xff]  ;;  %v280_v2 = vld [vmem:[#allocation4] sm:$0xff] }
 0x2f0   :  { %366 = vlog2.f32 %v273_v59 }
 0x2f3   :  { %v281_v6 = vld [vmem:[#allocation4 + $0x8] sm:$0xff] }
 0x2f6   :  { %v365_v60 = vpop.eup %364 }
 0x2f7   :  { %v275_v61 = vmul.f32 0.6931472, %v365_v60 }
 0x2f9   :  { %v278_v63 = vadd.f32 %v275_v61, %v270_v62 }
 0x2fa   :  { %v367_v1 = vpop.eup %366 }
 0x2fb   :  { %v282_v3 = vsub.f32 %v278_v63, %v280_v2  ;;  %v277_v4 = vmul.f32 0.6931472, %v367_v1 }
 0x2fd   :  { %284 = vst.msk [vmem:[%s548_s4] sm:$0xff] %vm62_vm0, %v282_v3  ;;  %v279_v5 = vadd.f32 %v277_v4, %v271_v0 }
 0x2ff   :  { %v283_v7 = vsub.f32 %v279_v5, %v281_v6 }
 0x301   :  { %285 = vst.msk [vmem:[%s548_s4 + $0x8] sm:$0xff] %vm62_vm0, %v283_v7 }
 0x302   :  { %290 = vsyncpa [#allocation6], 1 }
 0x303   :  { %291 = vsyncpa [#allocation8], 1 }

</bundles_post_ra>
